<compile_context>
chip_gen: v7x
topology: tpu7x:2x2x1
jax: 0.10.0
libtpu: 0.0.40
codegen_flags: <defaults>
</compile_context>

<pallas_src>
import functools

import jax
import jax.numpy as jnp
from jax.experimental import pallas as pl
from jax.experimental.pallas import tpu as pltpu

_LANES = 128
_ACC_ROWS = 8            # f32 vreg sublanes; accumulator is one vreg
_MAX_TILE_ROWS = 2048    # 1 MiB per f32 input block (4 MiB total double-buffered)


def _rmse_kernel(o_ref, t_ref, acc_ref, *, tile_rows, rows, num_tiles,
                 tiles_per_core, ragged, has_phantom):
    i = pl.program_id(0)   # core-split axis ("parallel")
    j = pl.program_id(1)   # sequential reduction axis ("arbitrary")
    blk = i * tiles_per_core + j          # logical (unclamped) tile index

    @pl.when(j == 0)
    def _init():
        acc_ref[...] = jnp.zeros_like(acc_ref)

    def _accumulate(mask_rows):
        # Cast after the VMEM load (no HBM-side upcast for bf16/f16 inputs).
        d = o_ref[...].astype(jnp.float32) - t_ref[...].astype(jnp.float32)
        if mask_rows:
            # Zero rows past the real array extent (ragged last tile only).
            local_row = jax.lax.broadcasted_iota(
                jnp.int32, (tile_rows, _LANES), 0)
            d = jnp.where(blk * tile_rows + local_row < rows, d, 0.0)
        sq = d * d
        # Pure-VPU partial reduction: fold the tile onto a single (8,128) vreg.
        acc_ref[...] += jnp.sum(sq.reshape(-1, _ACC_ROWS, _LANES), axis=0)

    if not ragged and not has_phantom:
        # Hot path: every tile is full and real; no masking anywhere.
        _accumulate(mask_rows=False)
    elif not ragged:
        # Tiles are full, but the 2-core split produced one phantom tile:
        # skip it (its clamped DMA re-reads already-counted data).
        @pl.when(blk < num_tiles)
        def _():
            _accumulate(mask_rows=False)
    else:
        # Interior tiles mask-free; only the last real (ragged) tile pays the
        # mask cost; phantom tiles (blk >= num_tiles) are skipped entirely.
        @pl.when(blk < num_tiles - 1)
        def _():
            _accumulate(mask_rows=False)

        @pl.when(blk == num_tiles - 1)
        def _():
            _accumulate(mask_rows=True)


def rmse_loss(output, target):
    """RMSE = sqrt(mean((output - target)^2)) == torch.sqrt(nn.MSELoss()(o, t))."""
    assert output.shape == target.shape
    n = output.size
    if n == 0:
        return jnp.float32(float("nan"))   # torch MSELoss on empty input -> nan

    o = jnp.ravel(output)
    t = jnp.ravel(target)
    if o.dtype != t.dtype:
        common = jnp.promote_types(o.dtype, t.dtype)
        o = o.astype(common)
        t = t.astype(common)

    # Minimal tail pad so the flat length is a multiple of (sublane*lane) for
    # the native dtype packing. Padded values are equal (0) in both operands,
    # so they contribute exactly 0 to the sum of squared differences.
    pack = max(1, 4 // jnp.dtype(o.dtype).itemsize)   # 1:f32, 2:bf16/f16, 4:i8
    row_align = _ACC_ROWS * pack
    align_elems = row_align * _LANES
    pad = (-n) % align_elems
    if pad:
        o = jnp.pad(o, (0, pad))
        t = jnp.pad(t, (0, pad))

    rows = o.shape[0] // _LANES
    o2 = o.reshape(rows, _LANES)
    t2 = t.reshape(rows, _LANES)

    tile_rows = min(_MAX_TILE_ROWS, rows)              # multiple of row_align
    num_tiles = -(-rows // tile_rows)
    num_cores = 2 if num_tiles >= 2 else 1             # v7x megacore; harmless on 1-TC chips
    tiles_per_core = -(-num_tiles // num_cores)
    has_phantom = (num_cores * tiles_per_core) != num_tiles
    ragged = (num_tiles * tile_rows) != rows

    if has_phantom:
        def in_map(i, j):
            # Clamp phantom tiles onto the last real tile; they are skipped
            # in-kernel so they contribute nothing.
            return (jnp.minimum(i * tiles_per_core + j, num_tiles - 1), 0)
    else:
        def in_map(i, j):
            return (i * tiles_per_core + j, 0)

    kernel = functools.partial(
        _rmse_kernel, tile_rows=tile_rows, rows=rows, num_tiles=num_tiles,
        tiles_per_core=tiles_per_core, ragged=ragged, has_phantom=has_phantom)

    partials = pl.pallas_call(
        kernel,
        out_shape=jax.ShapeDtypeStruct((num_cores * _ACC_ROWS, _LANES),
                                       jnp.float32),
        grid_spec=pltpu.PrefetchScalarGridSpec(
            num_scalar_prefetch=0,
            grid=(num_cores, tiles_per_core),
            in_specs=[
                pl.BlockSpec((tile_rows, _LANES), in_map),
                pl.BlockSpec((tile_rows, _LANES), in_map),
            ],
            out_specs=pl.BlockSpec((_ACC_ROWS, _LANES), lambda i, j: (i, 0)),
        ),
        compiler_params=pltpu.CompilerParams(
            dimension_semantics=("parallel", "arbitrary")),
    )(o2, t2)

    # Tiny epilogue: one cross-lane reduce + divide + sqrt over <=2 KiB.
    return jnp.sqrt(jnp.sum(partials) / jnp.float32(n))


if __name__ == "__main__":
    key = jax.random.PRNGKey(0)
    k1, k2 = jax.random.split(key)

    shape = (2, 4, 16, 16)
    output = jax.random.normal(k1, shape, dtype=jnp.float32)
    target = jax.random.normal(k2, shape, dtype=jnp.float32)

    loss = rmse_loss(output, target)
    loss = jax.block_until_ready(loss)

    ref = jnp.sqrt(jnp.mean((output - target) ** 2))
    assert jnp.allclose(loss, ref, rtol=1e-5, atol=1e-6), (loss, ref)

    print("KERNEL_OK")
</pallas_src>

<mosaic_0001>
module attributes {stable_mosaic.version = 11 : i64} {
  func.func @_rmse_kernel(%arg0: i32, %arg1: i32, %arg2: memref<16x128xf32, #tpu.memory_space<vmem>>, %arg3: memref<16x128xf32, #tpu.memory_space<vmem>>, %arg4: memref<8x128xf32, #tpu.memory_space<vmem>>) attributes {dimension_semantics = [#tpu.dimension_semantics<parallel>, #tpu.dimension_semantics<arbitrary>], iteration_bounds = array<i64: 1, 1>, scalar_prefetch = 0 : i64, scratch_operands = 0 : i64, tpu.core_type = #tpu.core_type<tc>, window_params = [{transform_indices = @transform_0, window_bounds = array<i64: 16, 128>}, {transform_indices = @transform_1, window_bounds = array<i64: 16, 128>}, {transform_indices = @transform_2, window_bounds = array<i64: 8, 128>}]} {
    %c0_i32 = arith.constant 0 : i32
    %0 = arith.cmpi eq, %arg1, %c0_i32 : i32
    %1 = arith.extui %0 : i1 to i32
    %c0_i32_0 = arith.constant 0 : i32
    %2 = arith.cmpi ne, %1, %c0_i32_0 : i32
    scf.if %2 {
      %cst_8 = arith.constant 0.000000e+00 : f32
      %12 = vector.broadcast %cst_8 : f32 to vector<8x128xf32>
      %c0_9 = arith.constant 0 : index
      %c0_10 = arith.constant 0 : index
      %13 = vector.load %arg4[%c0_9, %c0_10] : memref<8x128xf32, #tpu.memory_space<vmem>>, vector<8x128xf32>
      tpu.vector_store %arg4[%c0_9, %c0_10], %12 {strides = array<i32>} : memref<8x128xf32, #tpu.memory_space<vmem>>, vector<8x128xf32>,
    } else {
    }
    %c0 = arith.constant 0 : index
    %c0_1 = arith.constant 0 : index
    %3 = vector.load %arg2[%c0, %c0_1] : memref<16x128xf32, #tpu.memory_space<vmem>>, vector<16x128xf32>
    %c0_2 = arith.constant 0 : index
    %c0_3 = arith.constant 0 : index
    %4 = vector.load %arg3[%c0_2, %c0_3] : memref<16x128xf32, #tpu.memory_space<vmem>>, vector<16x128xf32>
    %5 = arith.subf %3, %4 : vector<16x128xf32>
    %6 = arith.mulf %5, %5 : vector<16x128xf32>
    %c0_4 = arith.constant 0 : index
    %c0_5 = arith.constant 0 : index
    %7 = vector.load %arg4[%c0_4, %c0_5] : memref<8x128xf32, #tpu.memory_space<vmem>>, vector<8x128xf32>
    %8 = vector.shape_cast %6 : vector<16x128xf32> to vector<2x8x128xf32>
    %cst = arith.constant dense<0.000000e+00> : vector<8x128xf32>
    %9 = vector.multi_reduction <add>, %8, %cst [0] : vector<2x8x128xf32> to vector<8x128xf32>
    %10 = arith.addf %7, %9 : vector<8x128xf32>
    %c0_6 = arith.constant 0 : index
    %c0_7 = arith.constant 0 : index
    %11 = vector.load %arg4[%c0_6, %c0_7] : memref<8x128xf32, #tpu.memory_space<vmem>>, vector<8x128xf32>
    tpu.vector_store %arg4[%c0_6, %c0_7], %10 {strides = array<i32>} : memref<8x128xf32, #tpu.memory_space<vmem>>, vector<8x128xf32>,
    return
  }
  func.func @transform_0(%arg0: i32, %arg1: i32) -> (i32, i32) {
    %c1_i32 = arith.constant 1 : i32
    %0 = arith.muli %arg0, %c1_i32 : i32
    %1 = arith.addi %0, %arg1 : i32
    %c0_i32 = arith.constant 0 : i32
    %c0_i32_0 = arith.constant 0 : i32
    return %1, %c0_i32 : i32, i32
  }
  func.func @transform_1(%arg0: i32, %arg1: i32) -> (i32, i32) {
    %c1_i32 = arith.constant 1 : i32
    %0 = arith.muli %arg0, %c1_i32 : i32
    %1 = arith.addi %0, %arg1 : i32
    %c0_i32 = arith.constant 0 : i32
    %c0_i32_0 = arith.constant 0 : i32
    return %1, %c0_i32 : i32, i32
  }
  func.func @transform_2(%arg0: i32, %arg1: i32) -> (i32, i32) {
    %c0_i32 = arith.constant 0 : i32
    %c0_i32_0 = arith.constant 0 : i32
    return %arg0, %c0_i32 : i32, i32
  }
}

</mosaic_0001>

<bundles_post_ra>
// kernel: tpu_custom_call.1
= control target key start
LH: loop header
LB: loop body
LE: loop exit
PB: predicated region body
PF: predicated region fallthrough
CT: control target
= control target key end

     0   :  { %7 = vsyncpa [#allocation3], 0  ;;  %s219_s0 = inlined_call_operand.hbm [shape: f32[16,128], index: 0, kind: input, shape index: {}]   ;;  %s220_s1 = inlined_call_operand.hbm [shape: f32[16,128], index: 1, kind: input, shape index: {}]   ;;  %s221_s2 = inlined_call_operand.hbm [shape: f32[8,128], index: 2, kind: output, shape index: {}]  }
   0x1   :  { %8 = vsyncpa [#allocation6], 0 }
   0x2   :  { %9 = vsyncpa [#allocation4], 0  ;;  %s163_s9 = smov [#allocation2]   ;;  %s91_s13 = scalar_lea.hbm %s219_s0, 256 }
   0x3   :  { %s19_s10 = sshll.u32 %s163_s9, 4  ;;  %p92_p0 = scmp.ne.s32.totalorder %s219_s0, %s91_s13  ;;  %s20_s10 = int_to_ptr.vmem [resolvable:$true] %s19_s10 }
   0x4   :  { %p95_p1 = scmp.lt.u32.totalorder %s91_s13, %s219_s0 }
   0x6   :  { %p97_p2 = pnand %p95_p1, %p92_p0 }
   0x8   :  { %100 = shalt.err (!%p97_p2)
}
   0x9   :  { %s101_s18 = scalar_lea.vmem %s20_s10, 256  ;;  %p106_p4 = scmp.lt.s32.totalorder %s20_s10, %s20_s10 }
   0xa   :  { %p102_p3 = scmp.ne.s32.totalorder %s20_s10, %s101_s18  ;;  %p107_p5 = scmp.lt.s32.totalorder %s101_s18, %s101_s18 }
   0xc   :  { %p108_p6 = por %p107_p5, %p106_p4 }
   0xe   :  { %p109_p7 = pnand %p108_p6, %p102_p3 }
  0x10   :  { %112 = shalt.err (!%p109_p7)
}
  0x11   :  { %s164_s19 = smov 128   ;;  %s165_s20 = smov 8  }
  0x12   :  { %25 = dma.hbm_to_vmem [thread:$0]  %s219_s0, 256, %s20_s10, [#allocation3], %s164_s19, %s164_s19, %s165_s20  }
  0x13   :  { %s166_s23 = smov [#allocation5]   ;;  %s113_s27 = scalar_lea.hbm %s220_s1, 256 }
  0x14   :  { %s35_s24 = sshll.u32 %s166_s23, 4  ;;  %p114_p8 = scmp.ne.s32.totalorder %s220_s1, %s113_s27  ;;  %s36_s24 = int_to_ptr.vmem [resolvable:$true] %s35_s24 }
  0x15   :  { %p117_p9 = scmp.lt.u32.totalorder %s113_s27, %s220_s1 }
  0x17   :  { %p119_p10 = pnand %p117_p9, %p114_p8 }
  0x19   :  { %122 = shalt.err (!%p119_p10)
}
  0x1a   :  { %s123_s4 = scalar_lea.vmem %s36_s24, 256  ;;  %p128_p12 = scmp.lt.s32.totalorder %s36_s24, %s36_s24 }
  0x1b   :  { %p124_p11 = scmp.ne.s32.totalorder %s36_s24, %s123_s4  ;;  %p129_p13 = scmp.lt.s32.totalorder %s123_s4, %s123_s4 }
  0x1d   :  { %p130_p0 = por %p129_p13, %p128_p12 }
  0x1f   :  { %p131_p1 = pnand %p130_p0, %p124_p11 }
  0x21   :  { %134 = shalt.err (!%p131_p1)
}
  0x22   :  { %41 = dma.hbm_to_vmem [thread:$0]  %s220_s1, 256, %s36_s24, [#allocation6], %s164_s19, %s164_s19, %s165_s20  }
  0x23   :  { %157 = dma.done.wait [#allocation3], 256  }
  0x24   :  { %158 = vsyncadd [#allocation3], 4294967040 }
  0x25   :  { %159 = dma.done.wait [#allocation6], 256  }
  0x26   :  { %160 = vsyncadd [#allocation6], 4294967040  ;;  %v57_v0 = vld [vmem:[#allocation2] sm:$0xff]  ;;  %v58_v1 = vld [vmem:[#allocation2 + $0x8] sm:$0xff]  ;;  %s167_s6 = smov [#allocation7]  }
  0x27   :  { %v59_v2 = vld [vmem:[#allocation5] sm:$0xff]  ;;  %v60_v3 = vld [vmem:[#allocation5 + $0x8] sm:$0xff]  ;;  %s75_s7 = sshll.u32 %s167_s6, 4  ;;  %s76_s7 = int_to_ptr.vmem [resolvable:$true] %s75_s7 }
  0x28   :  { %v61_v4 = vsub.f32 %v57_v0, %v59_v2  ;;  %v62_v5 = vsub.f32 %v58_v1, %v60_v3  ;;  %s135_s8 = scalar_lea.vmem %s76_s7, 128  ;;  %p140_p3 = scmp.lt.s32.totalorder %s76_s7, %s76_s7 }
  0x29   :  { %p136_p2 = scmp.ne.s32.totalorder %s76_s7, %s135_s8  ;;  %p141_p4 = scmp.lt.s32.totalorder %s135_s8, %s135_s8 }
  0x2a   :  { %v63_v6 = vmul.f32 %v61_v4, %v61_v4  ;;  %v64_v7 = vmul.f32 %v62_v5, %v62_v5 }
  0x2b   :  { %p142_p5 = por %p141_p4, %p140_p3 }
  0x2c   :  { %v66_v8 = vadd.f32 %v64_v7, %v63_v6 }
  0x2d   :  { %p143_p6 = pnand %p142_p5, %p136_p2 }
  0x2e   :  { %68 = vst [vmem:[#allocation7] sm:$0xff] %v66_v8 }
  0x2f   :  { %146 = shalt.err (!%p143_p6)
}
  0x30   :  { %s147_s10 = scalar_lea.hbm %s221_s2, 128 }
  0x31   :  { %p148_p7 = scmp.ne.s32.totalorder %s221_s2, %s147_s10  ;;  %p151_p8 = scmp.lt.u32.totalorder %s147_s10, %s221_s2 }
  0x33   :  { %p153_p9 = pnand %p151_p8, %p148_p7 }
  0x35   :  { %156 = shalt.err (!%p153_p9)
}
  0x36   :  { %78 = dma.vmem_to_hbm [thread:$0]  %s76_s7, 128, %s221_s2, [#allocation4]  }
  0x37   :  { %161 = dma.done.wait [#allocation4], 128  }
  0x38   :  { %162 = vsyncadd [#allocation4], 4294967168 }
  0x39   :  { %82 = vsyncpa [#allocation3], 1 }
  0x3a   :  { %83 = vsyncpa [#allocation6], 1 }
  0x3b   :  { %84 = vsyncpa [#allocation4], 1 }

</bundles_post_ra>
